<compile_context>
chip_gen: v7x
topology: tpu7x:2x2x1
jax: 0.10.0
libtpu: 0.0.40
codegen_flags: <defaults>
</compile_context>

<pallas_src>
import functools

import numpy as np
import jax
import jax.numpy as jnp
from jax.experimental import pallas as pl
from jax.experimental.pallas import tpu as pltpu


def _round_up(n, m):
    return ((n + m - 1) // m) * m


# ----------------------------------------------------------------------------
# Pallas kernel: one grid step processes Bb batch elements.  All matmuls are
# strictly 2-D and run on the MXU with f32 accumulation (except the exact
# one-hot gathers, which accumulate in compute_dtype).
# ----------------------------------------------------------------------------
def _dnri_decoder_kernel(
    x_ref,       # [Bb*Vp, D]   f32   node states (flattened, V padded to Vp)
    edges_ref,   # [Bb*Ep, TuH] f32   edge weights, pre-expanded per type block
    recv_ref,    # [Ep, Vp]     bf16  receiver-gather one-hot (shared / batch)
    send_ref,    # [Ep, Vp]     bf16  sender-gather one-hot (shared / batch)
    e2n_ref,     # [Vp, Ep]     bf16  edge->node aggregation (shared / batch)
    w1r_ref,     # [D, TuH]     cd    fused msg_fc1, receiver half
    w1s_ref,     # [D, TuH]     cd    fused msg_fc1, sender half
    w2_ref,      # [TuH, TuH]   cd    block-diagonal fused msg_fc2
    ow1a_ref,    # [D, H]       cd    out_fc1, input half
    owr_ref,     # [TuH, H]     cd    reducer @ out_fc1[D:]  (fused)
    ow2_ref,     # [H, H]       cd    out_fc2
    ow3_ref,     # [H, D]       cd    out_fc3
    bias_ref,    # [5, Wmax]    f32   packed biases (b1, b2, ob1, ob2, ob3)
    out_ref,     # [Bb*Vp, D]   f32
    *,
    in_size, hidden, tuh, v_pad, e_pad, bb, compute_dtype,
):
    D, H, TuH = in_size, hidden, tuh
    cd = compute_dtype
    f32 = jnp.float32

    x = x_ref[...]                                    # [Bb*Vp, D], f32
    recv_oh = recv_ref[...].astype(cd)
    send_oh = send_ref[...].astype(cd)

    # ---- per-batch one-hot gather (exact selection -> cd accumulation) ----
    # Shared [Ep, Vp] one-hots, statically unrolled over Bb; every slice /
    # concat boundary is a multiple of 8 sublanes by construction.
    recv_parts, send_parts = [], []
    for b in range(bb):
        xb = x[b * v_pad:(b + 1) * v_pad, :].astype(cd)       # [Vp, D]
        recv_parts.append(jnp.dot(recv_oh, xb, preferred_element_type=cd))
        send_parts.append(jnp.dot(send_oh, xb, preferred_element_type=cd))
    recv = recv_parts[0] if bb == 1 else jnp.concatenate(recv_parts, axis=0)
    send = send_parts[0] if bb == 1 else jnp.concatenate(send_parts, axis=0)
    # recv / send: [Bb*Ep, D] in cd

    bias = bias_ref[...]                              # [5, Wmax], f32
    b1 = bias[0:1, :TuH]
    b2 = bias[1:2, :TuH]
    ob1 = bias[2:3, :H]
    ob2 = bias[3:4, :H]
    ob3 = bias[4:5, :D]

    # ---- fused message MLP over all used edge types (fat row blocks) ------
    # fc1(cat([recv, send])) == recv @ W1r + send @ W1s
    h = (jnp.dot(recv, w1r_ref[...], preferred_element_type=f32)
         + jnp.dot(send, w1s_ref[...], preferred_element_type=f32) + b1)
    h = jnp.maximum(h, 0.0)                                   # [Bb*Ep, TuH]
    m = jnp.dot(h.astype(cd), w2_ref[...], preferred_element_type=f32) + b2
    m = jnp.maximum(m, 0.0)                                   # [Bb*Ep, TuH]

    # ---- edge-type weighting + fused (edge->node) . out_fc1[D:] -----------
    weighted = m * edges_ref[...]                             # f32 elementwise
    partial = jnp.dot(weighted.astype(cd), owr_ref[...],
                      preferred_element_type=f32)             # [Bb*Ep, H]
    # partial == all_msgs @ out_w1[D:]

    e2n = e2n_ref[...].astype(cd)
    agg_parts = []
    for b in range(bb):
        pb = partial[b * e_pad:(b + 1) * e_pad, :].astype(cd)  # [Ep, H]
        agg_parts.append(jnp.dot(e2n, pb, preferred_element_type=f32))
    aggfc = agg_parts[0] if bb == 1 else jnp.concatenate(agg_parts, axis=0)
    # aggfc == agg_msgs @ out_w1[D:]   : [Bb*Vp, H]

    # ---- output MLP (concat expressed as split matmuls) + residual --------
    h1 = jnp.dot(x.astype(cd), ow1a_ref[...],
                 preferred_element_type=f32) + aggfc + ob1
    h1 = jnp.maximum(h1, 0.0)
    h2 = jnp.dot(h1.astype(cd), ow2_ref[...],
                 preferred_element_type=f32) + ob2
    h2 = jnp.maximum(h2, 0.0)
    pred = jnp.dot(h2.astype(cd), ow3_ref[...],
                   preferred_element_type=f32) + ob3

    # TODO(synk): a lane-dense [Bb, Vp*D] output slab would avoid masked
    # partial stores but requires an in-kernel sublane->lane relayout.
    out_ref[...] = x + pred


# ----------------------------------------------------------------------------
# Wrapper: weight fusion / packing + pallas_call
# ----------------------------------------------------------------------------
def dnri_mlp_decoder(inputs, edges, params, *, send_idx, recv_idx, skip_first,
                     compute_dtype=jnp.bfloat16, batch_blocks=1):
    B, V, D = inputs.shape
    E = V * (V - 1)
    T, twoD, H = params["msg_w1"].shape
    assert twoD == 2 * D
    start = 1 if skip_first else 0
    Tu = T - start
    TuH = Tu * H
    assert Tu >= 1, "skip_first with a single edge type leaves no messages"
    assert B % batch_blocks == 0
    Bb = B // batch_blocks
    cd = compute_dtype

    # Pad E and V to sublane multiples so all per-batch slices / concats and
    # all per-block second-minor dims are 8-aligned (padded rows contribute
    # exactly zero: zero one-hot rows and zero edge weights).
    V_pad = _round_up(V, 8)
    E_pad = _round_up(E, 8)

    # ---- shared structural one-hots (bf16: exact 0/1 values) --------------
    recv_idx = np.asarray(recv_idx)
    send_idx = np.asarray(send_idx)
    recv_np = np.zeros((E_pad, V_pad), np.float32)
    recv_np[np.arange(E), recv_idx] = 1.0
    send_np = np.zeros((E_pad, V_pad), np.float32)
    send_np[np.arange(E), send_idx] = 1.0
    e2n_np = recv_np.T.copy()                          # [V_pad, E_pad]
    recv_oh = jnp.asarray(recv_np, jnp.bfloat16)
    send_oh = jnp.asarray(send_np, jnp.bfloat16)
    e2n = jnp.asarray(e2n_np, jnp.bfloat16)

    # ---- fuse per-type message MLP weights ---------------------------------
    w1u = params["msg_w1"][start:]                     # [Tu, 2D, H]
    w1_wide = jnp.transpose(w1u, (1, 0, 2)).reshape(2 * D, TuH)
    w1r = w1_wide[:D].astype(cd)
    w1s = w1_wide[D:].astype(cd)
    b1w = params["msg_b1"][start:].reshape(TuH)

    w2u = params["msg_w2"][start:]                     # [Tu, H, H]
    eye_t = jnp.eye(Tu, dtype=w2u.dtype)
    # block-diagonal [TuH, TuH] built in one op (no .at[].set() chain)
    w2_bd = jnp.einsum("tij,ts->tisj", w2u, eye_t).reshape(TuH, TuH).astype(cd)
    b2w = params["msg_b2"][start:].reshape(TuH)

    # ---- output MLP weights; fuse reducer into out_fc1's agg half ----------
    ow1 = params["out_w1"]                             # [D+H, H]
    ow1a = ow1[:D].astype(cd)                          # [D, H]
    fused_reduce = jnp.tile(ow1[D:], (Tu, 1)).astype(cd)   # [TuH, H]
    ow2 = params["out_w2"].astype(cd)
    ow3 = params["out_w3"].astype(cd)

    # ---- pack the five biases into one [5, Wmax] array ----------------------
    Wmax = max(TuH, H, D)
    pad1 = lambda v: jnp.pad(v, (0, Wmax - v.shape[0]))
    bias_pack = jnp.stack(
        [pad1(b1w), pad1(b2w),
         pad1(params["out_b1"].reshape(H)),
         pad1(params["out_b2"].reshape(H)),
         pad1(params["out_b3"].reshape(D))], axis=0).astype(jnp.float32)

    # ---- padded, flattened activations --------------------------------------
    x_p = jnp.pad(inputs.astype(jnp.float32),
                  ((0, 0), (0, V_pad - V), (0, 0)))
    x_flat = x_p.reshape(B * V_pad, D)

    edges_u = edges[:, :, start:].astype(jnp.float32)        # [B, E, Tu]
    edges_exp = jnp.repeat(edges_u, H, axis=-1)              # [B, E, TuH]
    edges_exp = jnp.pad(edges_exp, ((0, 0), (0, E_pad - E), (0, 0)))
    edges_flat = edges_exp.reshape(B * E_pad, TuH)

    kernel = functools.partial(
        _dnri_decoder_kernel,
        in_size=D, hidden=H, tuh=TuH, v_pad=V_pad, e_pad=E_pad, bb=Bb,
        compute_dtype=cd)

    blk = lambda i: (i, 0)       # per-batch-block operands
    cst = lambda i: (0, 0)       # constants (weights / structural matrices)

    out = pl.pallas_call(
        kernel,
        out_shape=jax.ShapeDtypeStruct((B * V_pad, D), jnp.float32),
        grid=(batch_blocks,),
        in_specs=[
            pl.BlockSpec((Bb * V_pad, D), blk),        # x (flattened, padded)
            pl.BlockSpec((Bb * E_pad, TuH), blk),      # pre-expanded edges
            pl.BlockSpec((E_pad, V_pad), cst),         # recv one-hot
            pl.BlockSpec((E_pad, V_pad), cst),         # send one-hot
            pl.BlockSpec((V_pad, E_pad), cst),         # edge->node one-hot
            pl.BlockSpec((D, TuH), cst),               # fused msg fc1 (recv)
            pl.BlockSpec((D, TuH), cst),               # fused msg fc1 (send)
            pl.BlockSpec((TuH, TuH), cst),             # block-diag msg fc2
            pl.BlockSpec((D, H), cst),                 # out_fc1 (input half)
            pl.BlockSpec((TuH, H), cst),               # fused reduce . out_fc1
            pl.BlockSpec((H, H), cst),                 # out_fc2
            pl.BlockSpec((H, D), cst),                 # out_fc3
            pl.BlockSpec((5, Wmax), cst),              # packed biases
        ],
        out_specs=pl.BlockSpec((Bb * V_pad, D), blk),
        compiler_params=pltpu.CompilerParams(
            dimension_semantics=("parallel",),
            vmem_limit_bytes=48 * 1024 * 1024),
    )(x_flat, edges_flat, recv_oh, send_oh, e2n, w1r, w1s, w2_bd,
      ow1a, fused_reduce, ow2, ow3, bias_pack)

    return out.reshape(B, V_pad, D)[:, :V, :]


# ----------------------------------------------------------------------------
# Pure-JAX reference (mirrors the PyTorch forward in eval mode, p=0 dropout)
# ----------------------------------------------------------------------------
def reference(inputs, edges, params, *, send_idx, recv_idx, skip_first):
    B, V, D = inputs.shape
    T = params["msg_w1"].shape[0]
    H = params["msg_w1"].shape[-1]
    start = 1 if skip_first else 0
    receivers = inputs[:, recv_idx, :]
    senders = inputs[:, send_idx, :]
    pre_msg = jnp.concatenate([receivers, senders], axis=-1)
    E = pre_msg.shape[1]
    all_msgs = jnp.zeros((B, E, H), jnp.float32)
    for i in range(start, T):
        msg = jax.nn.relu(pre_msg @ params["msg_w1"][i] + params["msg_b1"][i])
        msg = jax.nn.relu(msg @ params["msg_w2"][i] + params["msg_b2"][i])
        all_msgs = all_msgs + msg * edges[:, :, i:i + 1]
    e2n = np.zeros((E, V), np.float32)
    e2n[np.arange(E), np.asarray(recv_idx)] = 1.0         # encode_onehot(recv)
    agg = jnp.einsum("beh,ev->bvh", all_msgs, jnp.asarray(e2n))
    aug = jnp.concatenate([inputs, agg], axis=-1)
    h = jax.nn.relu(aug @ params["out_w1"] + params["out_b1"])
    h = jax.nn.relu(h @ params["out_w2"] + params["out_b2"])
    pred = h @ params["out_w3"] + params["out_b3"]
    return inputs + pred


# ----------------------------------------------------------------------------
if __name__ == "__main__":
    # num_vars=4, input_size=8, decoder_hidden=32, num_edge_types=3,
    # skip_first=True, batch=2, eval mode (dropout disabled).
    B, V, D, H, T = 2, 4, 8, 32, 3
    SKIP_FIRST = True
    E = V * (V - 1)

    adj = np.ones((V, V)) - np.eye(V)
    send_idx = np.where(adj)[0].astype(np.int32)
    recv_idx = np.where(adj)[1].astype(np.int32)

    key = jax.random.PRNGKey(0)
    ks = jax.random.split(key, 12)
    scale = 0.1
    params = {
        "msg_w1": scale * jax.random.normal(ks[0], (T, 2 * D, H), jnp.float32),
        "msg_b1": scale * jax.random.normal(ks[1], (T, 1, H), jnp.float32),
        "msg_w2": scale * jax.random.normal(ks[2], (T, H, H), jnp.float32),
        "msg_b2": scale * jax.random.normal(ks[3], (T, 1, H), jnp.float32),
        "out_w1": scale * jax.random.normal(ks[4], (D + H, H), jnp.float32),
        "out_b1": scale * jax.random.normal(ks[5], (1, H), jnp.float32),
        "out_w2": scale * jax.random.normal(ks[6], (H, H), jnp.float32),
        "out_b2": scale * jax.random.normal(ks[7], (1, H), jnp.float32),
        "out_w3": scale * jax.random.normal(ks[8], (H, D), jnp.float32),
        "out_b3": scale * jax.random.normal(ks[9], (1, D), jnp.float32),
    }

    inputs = jax.random.normal(ks[10], (B, V, D), jnp.float32)
    edge_logits = jax.random.normal(ks[11], (B, E, T), jnp.float32)
    edges = jax.nn.softmax(edge_logits, axis=-1)

    ref = reference(inputs, edges, params,
                    send_idx=send_idx, recv_idx=recv_idx,
                    skip_first=SKIP_FIRST)
    ref = jax.block_until_ready(ref)

    # f32 path, single fat grid step (bit-faithful up to matmul reassociation).
    out_f32 = dnri_mlp_decoder(inputs, edges, params,
                               send_idx=send_idx, recv_idx=recv_idx,
                               skip_first=SKIP_FIRST,
                               compute_dtype=jnp.float32, batch_blocks=1)
    out_f32 = jax.block_until_ready(out_f32)
    np.testing.assert_allclose(np.asarray(out_f32), np.asarray(ref),
                               rtol=1e-4, atol=1e-5)

    # f32 path, batch split across grid steps ("parallel" axis -> on v7x this
    # is how both TensorCores get used).
    out_mc = dnri_mlp_decoder(inputs, edges, params,
                              send_idx=send_idx, recv_idx=recv_idx,
                              skip_first=SKIP_FIRST,
                              compute_dtype=jnp.float32, batch_blocks=2)
    out_mc = jax.block_until_ready(out_mc)
    np.testing.assert_allclose(np.asarray(out_mc), np.asarray(ref),
                               rtol=1e-4, atol=1e-5)

    # Default path: bf16 matmul operands (MXU-native on v5e/v6e/v7x), f32
    # accumulation and f32 elementwise.  Loose tolerance by design (inputs
    # are rounded to bf16 before the message MLP; residual add stays f32).
    out_bf16 = dnri_mlp_decoder(inputs, edges, params,
                                send_idx=send_idx, recv_idx=recv_idx,
                                skip_first=SKIP_FIRST)
    out_bf16 = jax.block_until_ready(out_bf16)
    np.testing.assert_allclose(np.asarray(out_bf16), np.asarray(ref),
                               rtol=1e-1, atol=1e-1)

    print("KERNEL_OK")
</pallas_src>

<mosaic_0001>
module attributes {stable_mosaic.version = 11 : i64} {
  func.func @_dnri_decoder_kernel(%arg0: i32, %arg1: memref<16x8xf32, #tpu.memory_space<vmem>>, %arg2: memref<32x64xf32, #tpu.memory_space<vmem>>, %arg3: memref<16x8xbf16, #tpu.memory_space<vmem>>, %arg4: memref<16x8xbf16, #tpu.memory_space<vmem>>, %arg5: memref<8x16xbf16, #tpu.memory_space<vmem>>, %arg6: memref<8x64xf32, #tpu.memory_space<vmem>>, %arg7: memref<8x64xf32, #tpu.memory_space<vmem>>, %arg8: memref<64x64xf32, #tpu.memory_space<vmem>>, %arg9: memref<8x32xf32, #tpu.memory_space<vmem>>, %arg10: memref<64x32xf32, #tpu.memory_space<vmem>>, %arg11: memref<32x32xf32, #tpu.memory_space<vmem>>, %arg12: memref<32x8xf32, #tpu.memory_space<vmem>>, %arg13: memref<5x64xf32, #tpu.memory_space<vmem>>, %arg14: memref<16x8xf32, #tpu.memory_space<vmem>>) attributes {dimension_semantics = [#tpu.dimension_semantics<parallel>], iteration_bounds = array<i64: 1>, scalar_prefetch = 0 : i64, scratch_operands = 0 : i64, tpu.core_type = #tpu.core_type<tc>, window_params = [{transform_indices = @transform_0, window_bounds = array<i64: 16, 8>}, {transform_indices = @transform_1, window_bounds = array<i64: 32, 64>}, {pipeline_mode = #tpu.pipeline_mode<synchronous>, transform_indices = @transform_2, window_bounds = array<i64: 16, 8>}, {pipeline_mode = #tpu.pipeline_mode<synchronous>, transform_indices = @transform_3, window_bounds = array<i64: 16, 8>}, {pipeline_mode = #tpu.pipeline_mode<synchronous>, transform_indices = @transform_4, window_bounds = array<i64: 8, 16>}, {pipeline_mode = #tpu.pipeline_mode<synchronous>, transform_indices = @transform_5, window_bounds = array<i64: 8, 64>}, {pipeline_mode = #tpu.pipeline_mode<synchronous>, transform_indices = @transform_6, window_bounds = array<i64: 8, 64>}, {pipeline_mode = #tpu.pipeline_mode<synchronous>, transform_indices = @transform_7, window_bounds = array<i64: 64, 64>}, {pipeline_mode = #tpu.pipeline_mode<synchronous>, transform_indices = @transform_8, window_bounds = array<i64: 8, 32>}, {pipeline_mode = #tpu.pipeline_mode<synchronous>, transform_indices = @transform_9, window_bounds = array<i64: 64, 32>}, {pipeline_mode = #tpu.pipeline_mode<synchronous>, transform_indices = @transform_10, window_bounds = array<i64: 32, 32>}, {pipeline_mode = #tpu.pipeline_mode<synchronous>, transform_indices = @transform_11, window_bounds = array<i64: 32, 8>}, {pipeline_mode = #tpu.pipeline_mode<synchronous>, transform_indices = @transform_12, window_bounds = array<i64: 5, 64>}, {transform_indices = @transform_13, window_bounds = array<i64: 16, 8>}]} {
    %c0 = arith.constant 0 : index
    %c0_0 = arith.constant 0 : index
    %0 = vector.load %arg1[%c0, %c0_0] : memref<16x8xf32, #tpu.memory_space<vmem>>, vector<16x8xf32>
    %c0_1 = arith.constant 0 : index
    %c0_2 = arith.constant 0 : index
    %1 = vector.load %arg3[%c0_1, %c0_2] : memref<16x8xbf16, #tpu.memory_space<vmem>>, vector<16x8xbf16>
    %2 = arith.extf %1 : vector<16x8xbf16> to vector<16x8xf32>
    %c0_3 = arith.constant 0 : index
    %c0_4 = arith.constant 0 : index
    %3 = vector.load %arg4[%c0_3, %c0_4] : memref<16x8xbf16, #tpu.memory_space<vmem>>, vector<16x8xbf16>
    %4 = arith.extf %3 : vector<16x8xbf16> to vector<16x8xf32>
    %5 = vector.extract_strided_slice %0 {offsets = [0, 0], sizes = [8, 8], strides = [1, 1]} : vector<16x8xf32> to vector<8x8xf32>
    %cst = arith.constant dense<0.000000e+00> : vector<16x8xf32>
    %6 = tpu.matmul %2, %5, %cst {dimension_numbers = #tpu.dot_dimension_numbers<[1], [0], [0], [1], [0, 0, 1, 1], [], []>} : vector<16x8xf32>, vector<8x8xf32>, vector<16x8xf32> -> vector<16x8xf32>
    %cst_5 = arith.constant dense<0.000000e+00> : vector<16x8xf32>
    %7 = tpu.matmul %4, %5, %cst_5 {dimension_numbers = #tpu.dot_dimension_numbers<[1], [0], [0], [1], [0, 0, 1, 1], [], []>} : vector<16x8xf32>, vector<8x8xf32>, vector<16x8xf32> -> vector<16x8xf32>
    %8 = vector.extract_strided_slice %0 {offsets = [8, 0], sizes = [8, 8], strides = [1, 1]} : vector<16x8xf32> to vector<8x8xf32>
    %cst_6 = arith.constant dense<0.000000e+00> : vector<16x8xf32>
    %9 = tpu.matmul %2, %8, %cst_6 {dimension_numbers = #tpu.dot_dimension_numbers<[1], [0], [0], [1], [0, 0, 1, 1], [], []>} : vector<16x8xf32>, vector<8x8xf32>, vector<16x8xf32> -> vector<16x8xf32>
    %cst_7 = arith.constant dense<0.000000e+00> : vector<16x8xf32>
    %10 = tpu.matmul %4, %8, %cst_7 {dimension_numbers = #tpu.dot_dimension_numbers<[1], [0], [0], [1], [0, 0, 1, 1], [], []>} : vector<16x8xf32>, vector<8x8xf32>, vector<16x8xf32> -> vector<16x8xf32>
    %11 = tpu.concatenate %6, %9 in 0 : vector<16x8xf32>, vector<16x8xf32> -> vector<32x8xf32>
    %12 = tpu.concatenate %7, %10 in 0 : vector<16x8xf32>, vector<16x8xf32> -> vector<32x8xf32>
    %c0_8 = arith.constant 0 : index
    %c0_9 = arith.constant 0 : index
    %13 = vector.load %arg13[%c0_8, %c0_9] : memref<5x64xf32, #tpu.memory_space<vmem>>, vector<5x64xf32>
    %14 = vector.extract_strided_slice %13 {offsets = [0, 0], sizes = [1, 64], strides = [1, 1]} : vector<5x64xf32> to vector<1x64xf32>
    %15 = vector.extract_strided_slice %13 {offsets = [1, 0], sizes = [1, 64], strides = [1, 1]} : vector<5x64xf32> to vector<1x64xf32>
    %16 = vector.extract_strided_slice %13 {offsets = [2, 0], sizes = [1, 32], strides = [1, 1]} : vector<5x64xf32> to vector<1x32xf32>
    %17 = vector.extract_strided_slice %13 {offsets = [3, 0], sizes = [1, 32], strides = [1, 1]} : vector<5x64xf32> to vector<1x32xf32>
    %18 = vector.extract_strided_slice %13 {offsets = [4, 0], sizes = [1, 8], strides = [1, 1]} : vector<5x64xf32> to vector<1x8xf32>
    %c0_10 = arith.constant 0 : index
    %c0_11 = arith.constant 0 : index
    %19 = vector.load %arg6[%c0_10, %c0_11] : memref<8x64xf32, #tpu.memory_space<vmem>>, vector<8x64xf32>
    %cst_12 = arith.constant dense<0.000000e+00> : vector<32x64xf32>
    %20 = tpu.matmul %11, %19, %cst_12 {dimension_numbers = #tpu.dot_dimension_numbers<[1], [0], [0], [1], [0, 0, 1, 1], [], []>} : vector<32x8xf32>, vector<8x64xf32>, vector<32x64xf32> -> vector<32x64xf32>
    %c0_13 = arith.constant 0 : index
    %c0_14 = arith.constant 0 : index
    %21 = vector.load %arg7[%c0_13, %c0_14] : memref<8x64xf32, #tpu.memory_space<vmem>>, vector<8x64xf32>
    %cst_15 = arith.constant dense<0.000000e+00> : vector<32x64xf32>
    %22 = tpu.matmul %12, %21, %cst_15 {dimension_numbers = #tpu.dot_dimension_numbers<[1], [0], [0], [1], [0, 0, 1, 1], [], []>} : vector<32x8xf32>, vector<8x64xf32>, vector<32x64xf32> -> vector<32x64xf32>
    %23 = arith.addf %20, %22 : vector<32x64xf32>
    %24 = vector.broadcast %14 : vector<1x64xf32> to vector<32x64xf32>
    %25 = arith.addf %23, %24 : vector<32x64xf32>
    %cst_16 = arith.constant 0.000000e+00 : f32
    %26 = vector.broadcast %cst_16 : f32 to vector<32x64xf32>
    %27 = arith.maximumf %25, %26 : vector<32x64xf32>
    %c0_17 = arith.constant 0 : index
    %c0_18 = arith.constant 0 : index
    %28 = vector.load %arg8[%c0_17, %c0_18] : memref<64x64xf32, #tpu.memory_space<vmem>>, vector<64x64xf32>
    %cst_19 = arith.constant dense<0.000000e+00> : vector<32x64xf32>
    %29 = tpu.matmul %27, %28, %cst_19 {dimension_numbers = #tpu.dot_dimension_numbers<[1], [0], [0], [1], [0, 0, 1, 1], [], []>} : vector<32x64xf32>, vector<64x64xf32>, vector<32x64xf32> -> vector<32x64xf32>
    %30 = vector.broadcast %15 : vector<1x64xf32> to vector<32x64xf32>
    %31 = arith.addf %29, %30 : vector<32x64xf32>
    %cst_20 = arith.constant 0.000000e+00 : f32
    %32 = vector.broadcast %cst_20 : f32 to vector<32x64xf32>
    %33 = arith.maximumf %31, %32 : vector<32x64xf32>
    %c0_21 = arith.constant 0 : index
    %c0_22 = arith.constant 0 : index
    %34 = vector.load %arg2[%c0_21, %c0_22] : memref<32x64xf32, #tpu.memory_space<vmem>>, vector<32x64xf32>
    %35 = arith.mulf %33, %34 : vector<32x64xf32>
    %c0_23 = arith.constant 0 : index
    %c0_24 = arith.constant 0 : index
    %36 = vector.load %arg10[%c0_23, %c0_24] : memref<64x32xf32, #tpu.memory_space<vmem>>, vector<64x32xf32>
    %cst_25 = arith.constant dense<0.000000e+00> : vector<32x32xf32>
    %37 = tpu.matmul %35, %36, %cst_25 {dimension_numbers = #tpu.dot_dimension_numbers<[1], [0], [0], [1], [0, 0, 1, 1], [], []>} : vector<32x64xf32>, vector<64x32xf32>, vector<32x32xf32> -> vector<32x32xf32>
    %c0_26 = arith.constant 0 : index
    %c0_27 = arith.constant 0 : index
    %38 = vector.load %arg5[%c0_26, %c0_27] : memref<8x16xbf16, #tpu.memory_space<vmem>>, vector<8x16xbf16>
    %39 = arith.extf %38 : vector<8x16xbf16> to vector<8x16xf32>
    %40 = vector.extract_strided_slice %37 {offsets = [0, 0], sizes = [16, 32], strides = [1, 1]} : vector<32x32xf32> to vector<16x32xf32>
    %cst_28 = arith.constant dense<0.000000e+00> : vector<8x32xf32>
    %41 = tpu.matmul %39, %40, %cst_28 {dimension_numbers = #tpu.dot_dimension_numbers<[1], [0], [0], [1], [0, 0, 1, 1], [], []>} : vector<8x16xf32>, vector<16x32xf32>, vector<8x32xf32> -> vector<8x32xf32>
    %42 = vector.extract_strided_slice %37 {offsets = [16, 0], sizes = [16, 32], strides = [1, 1]} : vector<32x32xf32> to vector<16x32xf32>
    %cst_29 = arith.constant dense<0.000000e+00> : vector<8x32xf32>
    %43 = tpu.matmul %39, %42, %cst_29 {dimension_numbers = #tpu.dot_dimension_numbers<[1], [0], [0], [1], [0, 0, 1, 1], [], []>} : vector<8x16xf32>, vector<16x32xf32>, vector<8x32xf32> -> vector<8x32xf32>
    %44 = tpu.concatenate %41, %43 in 0 : vector<8x32xf32>, vector<8x32xf32> -> vector<16x32xf32>
    %c0_30 = arith.constant 0 : index
    %c0_31 = arith.constant 0 : index
    %45 = vector.load %arg9[%c0_30, %c0_31] : memref<8x32xf32, #tpu.memory_space<vmem>>, vector<8x32xf32>
    %cst_32 = arith.constant dense<0.000000e+00> : vector<16x32xf32>
    %46 = tpu.matmul %0, %45, %cst_32 {dimension_numbers = #tpu.dot_dimension_numbers<[1], [0], [0], [1], [0, 0, 1, 1], [], []>} : vector<16x8xf32>, vector<8x32xf32>, vector<16x32xf32> -> vector<16x32xf32>
    %47 = arith.addf %46, %44 : vector<16x32xf32>
    %48 = vector.broadcast %16 : vector<1x32xf32> to vector<16x32xf32>
    %49 = arith.addf %47, %48 : vector<16x32xf32>
    %cst_33 = arith.constant 0.000000e+00 : f32
    %50 = vector.broadcast %cst_33 : f32 to vector<16x32xf32>
    %51 = arith.maximumf %49, %50 : vector<16x32xf32>
    %c0_34 = arith.constant 0 : index
    %c0_35 = arith.constant 0 : index
    %52 = vector.load %arg11[%c0_34, %c0_35] : memref<32x32xf32, #tpu.memory_space<vmem>>, vector<32x32xf32>
    %cst_36 = arith.constant dense<0.000000e+00> : vector<16x32xf32>
    %53 = tpu.matmul %51, %52, %cst_36 {dimension_numbers = #tpu.dot_dimension_numbers<[1], [0], [0], [1], [0, 0, 1, 1], [], []>} : vector<16x32xf32>, vector<32x32xf32>, vector<16x32xf32> -> vector<16x32xf32>
    %54 = vector.broadcast %17 : vector<1x32xf32> to vector<16x32xf32>
    %55 = arith.addf %53, %54 : vector<16x32xf32>
    %cst_37 = arith.constant 0.000000e+00 : f32
    %56 = vector.broadcast %cst_37 : f32 to vector<16x32xf32>
    %57 = arith.maximumf %55, %56 : vector<16x32xf32>
    %c0_38 = arith.constant 0 : index
    %c0_39 = arith.constant 0 : index
    %58 = vector.load %arg12[%c0_38, %c0_39] : memref<32x8xf32, #tpu.memory_space<vmem>>, vector<32x8xf32>
    %cst_40 = arith.constant dense<0.000000e+00> : vector<16x8xf32>
    %59 = tpu.matmul %57, %58, %cst_40 {dimension_numbers = #tpu.dot_dimension_numbers<[1], [0], [0], [1], [0, 0, 1, 1], [], []>} : vector<16x32xf32>, vector<32x8xf32>, vector<16x8xf32> -> vector<16x8xf32>
    %60 = vector.broadcast %18 : vector<1x8xf32> to vector<16x8xf32>
    %61 = arith.addf %59, %60 : vector<16x8xf32>
    %62 = arith.addf %0, %61 : vector<16x8xf32>
    %c0_41 = arith.constant 0 : index
    %c0_42 = arith.constant 0 : index
    %63 = vector.load %arg14[%c0_41, %c0_42] : memref<16x8xf32, #tpu.memory_space<vmem>>, vector<16x8xf32>
    tpu.vector_store %arg14[%c0_41, %c0_42], %62 {strides = array<i32>} : memref<16x8xf32, #tpu.memory_space<vmem>>, vector<16x8xf32>,
    return
  }
  func.func @transform_0(%arg0: i32) -> (i32, i32) {
    %c0_i32 = arith.constant 0 : i32
    %c0_i32_0 = arith.constant 0 : i32
    return %arg0, %c0_i32 : i32, i32
  }
  func.func @transform_1(%arg0: i32) -> (i32, i32) {
    %c0_i32 = arith.constant 0 : i32
    %c0_i32_0 = arith.constant 0 : i32
    return %arg0, %c0_i32 : i32, i32
  }
  func.func @transform_2(%arg0: i32) -> (i32, i32) {
    %c0_i32 = arith.constant 0 : i32
    %c0_i32_0 = arith.constant 0 : i32
    %c0_i32_1 = arith.constant 0 : i32
    return %c0_i32, %c0_i32_0 : i32, i32
  }
  func.func @transform_3(%arg0: i32) -> (i32, i32) {
    %c0_i32 = arith.constant 0 : i32
    %c0_i32_0 = arith.constant 0 : i32
    %c0_i32_1 = arith.constant 0 : i32
    return %c0_i32, %c0_i32_0 : i32, i32
  }
  func.func @transform_4(%arg0: i32) -> (i32, i32) {
    %c0_i32 = arith.constant 0 : i32
    %c0_i32_0 = arith.constant 0 : i32
    %c0_i32_1 = arith.constant 0 : i32
    return %c0_i32, %c0_i32_0 : i32, i32
  }
  func.func @transform_5(%arg0: i32) -> (i32, i32) {
    %c0_i32 = arith.constant 0 : i32
    %c0_i32_0 = arith.constant 0 : i32
    %c0_i32_1 = arith.constant 0 : i32
    return %c0_i32, %c0_i32_0 : i32, i32
  }
  func.func @transform_6(%arg0: i32) -> (i32, i32) {
    %c0_i32 = arith.constant 0 : i32
    %c0_i32_0 = arith.constant 0 : i32
    %c0_i32_1 = arith.constant 0 : i32
    return %c0_i32, %c0_i32_0 : i32, i32
  }
  func.func @transform_7(%arg0: i32) -> (i32, i32) {
    %c0_i32 = arith.constant 0 : i32
    %c0_i32_0 = arith.constant 0 : i32
    %c0_i32_1 = arith.constant 0 : i32
    return %c0_i32, %c0_i32_0 : i32, i32
  }
  func.func @transform_8(%arg0: i32) -> (i32, i32) {
    %c0_i32 = arith.constant 0 : i32
    %c0_i32_0 = arith.constant 0 : i32
    %c0_i32_1 = arith.constant 0 : i32
    return %c0_i32, %c0_i32_0 : i32, i32
  }
  func.func @transform_9(%arg0: i32) -> (i32, i32) {
    %c0_i32 = arith.constant 0 : i32
    %c0_i32_0 = arith.constant 0 : i32
    %c0_i32_1 = arith.constant 0 : i32
    return %c0_i32, %c0_i32_0 : i32, i32
  }
  func.func @transform_10(%arg0: i32) -> (i32, i32) {
    %c0_i32 = arith.constant 0 : i32
    %c0_i32_0 = arith.constant 0 : i32
    %c0_i32_1 = arith.constant 0 : i32
    return %c0_i32, %c0_i32_0 : i32, i32
  }
  func.func @transform_11(%arg0: i32) -> (i32, i32) {
    %c0_i32 = arith.constant 0 : i32
    %c0_i32_0 = arith.constant 0 : i32
    %c0_i32_1 = arith.constant 0 : i32
    return %c0_i32, %c0_i32_0 : i32, i32
  }
  func.func @transform_12(%arg0: i32) -> (i32, i32) {
    %c0_i32 = arith.constant 0 : i32
    %c0_i32_0 = arith.constant 0 : i32
    %c0_i32_1 = arith.constant 0 : i32
    return %c0_i32, %c0_i32_0 : i32, i32
  }
  func.func @transform_13(%arg0: i32) -> (i32, i32) {
    %c0_i32 = arith.constant 0 : i32
    %c0_i32_0 = arith.constant 0 : i32
    return %arg0, %c0_i32 : i32, i32
  }
}

</mosaic_0001>

<bundles_post_ra>
// kernel: tpu_custom_call.1
= control target key start
LH: loop header
LB: loop body
LE: loop exit
PB: predicated region body
PF: predicated region fallthrough
CT: control target
= control target key end

     0   :  { %18 = vsyncpa [#allocation3], 0  ;;  %s1555_s25 = smov [#allocation2]   ;;  %s1819_s0 = inlined_call_operand.vmem [shape: f32[16,8], index: 0, kind: input, shape index: {}]   ;;  %s1820_s1 = inlined_call_operand.vmem [shape: f32[32,64], index: 1, kind: input, shape index: {}]   ;;  %s1821_s2 = inlined_call_operand.vmem [shape: bf16[16,8], index: 2, kind: input, shape index: {}]   ;;  %s1822_s3 = inlined_call_operand.vmem [shape: bf16[16,8], index: 3, kind: input, shape index: {}]   ;;  %s1823_s4 = inlined_call_operand.hbm [shape: bf16[8,16], index: 4, kind: input, shape index: {}]   ;;  %s1824_s5 = inlined_call_operand.vmem [shape: f32[8,64], index: 5, kind: input, shape index: {}]   ;;  %s1825_s6 = inlined_call_operand.vmem [shape: f32[8,64], index: 6, kind: input, shape index: {}]   ;;  %s1826_s7 = inlined_call_operand.vmem [shape: f32[64,64], index: 7, kind: input, shape index: {}]   ;;  %s1827_s8 = inlined_call_operand.vmem [shape: f32[8,32], index: 8, kind: input, shape index: {}]   ;;  %s1828_s9 = inlined_call_operand.vmem [shape: f32[64,32], index: 9, kind: input, shape index: {}]   ;;  %s1829_s10 = inlined_call_operand.vmem [shape: f32[32,32], index: 10, kind: input, shape index: {}]   ;;  %s1830_s11 = inlined_call_operand.vmem [shape: f32[32,8], index: 11, kind: input, shape index: {}]   ;;  %s1831_s12 = inlined_call_operand.vmem [shape: f32[5,64], index: 12, kind: input, shape index: {}]   ;;  %s1832_s13 = inlined_call_operand.vmem [shape: f32[16,8], index: 13, kind: output, shape index: {}]  }
   0x1   :  { %s33_s26 = sshll.u32 %s1555_s25, 4  ;;  %s1531_s29 = scalar_lea.hbm %s1823_s4, 64  ;;  %s34_s26 = int_to_ptr.vmem [resolvable:$true] %s33_s26 }
   0x2   :  { %p1532_p0 = scmp.ne.s32.totalorder %s1823_s4, %s1531_s29  ;;  %p1535_p1 = scmp.lt.u32.totalorder %s1531_s29, %s1823_s4 }
   0x4   :  { %p1537_p2 = pnand %p1535_p1, %p1532_p0 }
   0x6   :  { %1540 = shalt.err (!%p1537_p2)
}
   0x7   :  { %s1541_s17 = scalar_lea.vmem %s34_s26, 64  ;;  %p1546_p4 = scmp.lt.s32.totalorder %s34_s26, %s34_s26 }
   0x8   :  { %p1542_p3 = scmp.ne.s32.totalorder %s34_s26, %s1541_s17  ;;  %p1547_p5 = scmp.lt.s32.totalorder %s1541_s17, %s1541_s17 }
   0xa   :  { %p1548_p6 = por %p1547_p5, %p1546_p4 }
   0xc   :  { %p1549_p7 = pnand %p1548_p6, %p1542_p3 }
   0xe   :  { %1552 = shalt.err (!%p1549_p7)
}
   0xf   :  { %36 = dma.hbm_to_vmem [thread:$0]  %s1823_s4, 64, %s34_s26, [#allocation3]  }
  0x10   :  { %1553 = dma.done.wait [#allocation3], 64  }
  0x11   :  { %1554 = vsyncadd [#allocation3], 4294967232  ;;  %v1644_v0 = vld [vmem:[%s1819_s0] sm:$0xff]  ;;  %vm66_vm0 = vcmask 64512   ;;  %v1652_v2 = vld [vmem:[%s1819_s0 + $0x8] sm:$0xff]  ;;  %v576_v36 = vlaneseq  ;;  %vm600_vm1 = vcmask 523264  }
  0x12   :  { %v1278_v1 = vld [vmem:[%s1822_s3] sm:$0xff]   ;;  %1353 = vmatprep.subr.mxu1 %v1644_v0  ;;  %1348 = vmatprep.subr.mxu0 %v1644_v0  ;;  %v589_v11 = vld [vmem:[%s1826_s7 + $0x8] sm:$0xff]  ;;  %v590_v12 = vld [vmem:[%s1826_s7 + $0x10] sm:$0xff]  ;;  %vm1557_vm2 = vmmov 0   ;;  %vm817_vm3 = vcmask 130048   ;;  %vm1059_vm4 = vcmask 261120  }
  0x13   :  { %v1279_v3 = vunpack.c.l.bf16 %v1278_v1  ;;  %v1280_v4 = vunpack.c.h.bf16 %v1278_v1  ;;  %v1274_v5 = vld [vmem:[%s1821_s2] sm:$0xff]   ;;  %1354 = vmatpush3.msra.mxu1 %v1644_v0  ;;  %1349 = vmatpush3.msra.mxu0 %v1644_v0  ;;  %v591_v14 = vld [vmem:[%s1826_s7 + $0x18] sm:$0xff]  ;;  %v593_v17 = vld [vmem:[%s1826_s7 + $0x28] sm:$0xff]  ;;  %v1723_v37 = vshrl.u32 %v576_v36, 7 }
  0x14   :  { %v1275_v6 = vunpack.c.l.bf16 %v1274_v5  ;;  %v1276_v7 = vunpack.c.h.bf16 %v1274_v5  ;;  %1363 = vmatprep.subr.mxu1 %v1652_v2  ;;  %1358 = vmatprep.subr.mxu0 %v1652_v2  ;;  %v381_v8 = vld [vmem:[%s1825_s6] sm:$0xff]  ;;  %v1473_v15 = vpack.c.bf16 %v591_v14, %v590_v12  ;;  %v594_v27 = vld [vmem:[%s1826_s7 + $0x30] sm:$0xff]  ;;  %v595_v28 = vld [vmem:[%s1826_s7 + $0x38] sm:$0xff] }
  0x15   :  { %1355 = vmatprep.mubr.msk.f32.mxu1 %vm66_vm0, %v1279_v3  ;;  %v380_v9 = vld [vmem:[%s1824_s5] sm:$0xff]  ;;  %v1481_v29 = vpack.c.bf16 %v595_v28, %v594_v27  ;;  %v711_v31 = vld [vmem:[%s1828_s9 + $0x8] sm:$0xff]  ;;  %v712_v32 = vld [vmem:[%s1828_s9 + $0x10] sm:$0xff]  ;;  %v578_v38 = vsub.s32 0, %v1723_v37  ;;  %v598_v59 = vsub.s32 1, %v1723_v37 }
  0x16   :  { %1356 = vmatmul.mubr.msk.f32.vlgmr.msra.gmra.mrb[0].mxu1 %vm66_vm0, %v1280_v4  ;;  %1350 = vmatprep.mubr.msk.f32.mxu0 %vm66_vm0, %v1275_v6  ;;  %v588_v10 = vld [vmem:[%s1826_s7] sm:$0xff]  ;;  %v713_v34 = vld [vmem:[%s1828_s9 + $0x18] sm:$0xff]  ;;  %v715_v54 = vld [vmem:[%s1828_s9 + $0x28] sm:$0xff] }
  0x17   :  { %1364 = vmatpush3.msra.mxu1 %v1652_v2  ;;  %1365 = vmatprep.mubr.msk.f32.mxu1 %vm66_vm0, %v1279_v3  ;;  %v1469_v13 = vpack.c.bf16 %v589_v11, %v588_v10  ;;  %v592_v16 = vld [vmem:[%s1826_s7 + $0x20] sm:$0xff]  ;;  %v1489_v35 = vpack.c.bf16 %v713_v34, %v712_v32  ;;  %v716_v56 = vld [vmem:[%s1828_s9 + $0x30] sm:$0xff]  ;;  %v717_v57 = vld [vmem:[%s1828_s9 + $0x38] sm:$0xff] }
  0x18   :  { %1351 = vmatmul.mubr.msk.f32.vlgmr.msra.gmra.mrb[0].mxu0 %vm66_vm0, %v1276_v7  ;;  %v1477_v18 = vpack.c.bf16 %v593_v17, %v592_v16  ;;  %v710_v30 = vld [vmem:[%s1828_s9] sm:$0xff]  ;;  %v1497_v58 = vpack.c.bf16 %v717_v57, %v716_v56  ;;  %v703_v5 = vld [vmem:[%s1820_s1 + $0x8] sm:$0xff]  ;;  %v704_v14 = vld [vmem:[%s1820_s1 + $0x10] sm:$0xff] }
  0x19   :  { %1359 = vmatpush3.msra.mxu0 %v1652_v2  ;;  %1360 = vmatprep.mubr.msk.f32.mxu0 %vm66_vm0, %v1275_v6  ;;  %v1485_v33 = vpack.c.bf16 %v711_v31, %v710_v30  ;;  %v1729_v39 = vld [vmem:[%s1831_s12] sm:$0x1f]  ;;  %v1052_v31 = vld [vmem:[%s1829_s10 + $0x8] sm:$0xff]  ;;  %v1054_v34 = vld [vmem:[%s1829_s10 + $0x18] sm:$0xff] }
  0x1a   :  { %1366 = vmatmul.mubr.msk.f32.vlgmr.msra.gmra.mrb[2].mxu1 %vm66_vm0, %v1280_v4  ;;  %1368 = vmatprep.subr.mxu0 %v381_v8  ;;  %v579_v40 = vrot.slane %v1729_v39, %v578_v38  ;;  %v714_v53 = vld [vmem:[%s1828_s9 + $0x20] sm:$0xff]  ;;  %v599_v60 = vrot.slane %v1729_v39, %v598_v59  ;;  %v1144_v38 = vld [vmem:[%s1830_s11 + $0x8] sm:$0xff]  ;;  %v1146_v56 = vld [vmem:[%s1830_s11 + $0x18] sm:$0xff] }
  0x1b   :  { %1470 = vmatprep.subr.bf16.mxu1 %v1469_v13  ;;  %v1493_v55 = vpack.c.bf16 %v715_v54, %v714_v53  ;;  %v702_v4 = vld [vmem:[%s1820_s1] sm:$0xff] }
  0x1c   :  { %1361 = vmatmul.mubr.msk.f32.vlgmr.msra.gmra.mrb[2].mxu0 %vm66_vm0, %v1276_v7  ;;  %1472 = vmatpush3.bf16.msra.mxu1 %v1469_v13  ;;  %v1051_v30 = vld [vmem:[%s1829_s10] sm:$0xff] }
  0x1d   :  { %1369 = vmatpush3.msra.mxu0 %v381_v8  ;;  %1474 = vmatprep.subr.bf16.mxu1 %v1473_v15  ;;  %v1507_v32 = vpack.c.bf16 %v1052_v31, %v1051_v30  ;;  %v1143_v36 = vld [vmem:[%s1830_s11] sm:$0xff] }
  0x1e   :  { %1376 = vmatprep.subr.mxu0 %v380_v9 }
  0x20   :  { %1476 = vmatpush3.bf16.msra.mxu1 %v1473_v15  ;;  %v705_v15 = vld [vmem:[%s1820_s1 + $0x18] sm:$0xff] }
  0x21   :  { %1478 = vmatprep.subr.bf16.mxu1 %v1477_v18 }
  0x24   :  { %1480 = vmatpush3.bf16.msra.mxu1 %v1477_v18 }
  0x25   :  { %1482 = vmatprep.subr.bf16.mxu1 %v1481_v29 }
  0x28   :  { %1484 = vmatpush3.bf16.msra.mxu1 %v1481_v29  ;;  %v961_v29 = vld [vmem:[%s1827_s8] sm:$0xff] }
  0xe9   :  { %v1357_v19 = vpop.f32.mrb[0].mxu1 }
  0xea   :  { %v220_v20 = vpop.f32.mrb[1].mxu1 }
  0xeb   :  { %1370 = vmatprep.mubr.msk.f32.mxu0 %vm66_vm0, %v220_v20  ;;  %v1352_v21 = vpop.f32.mrb[0].mxu0  ;;  %v1558_v20 = vmov 0.0  }
  0xec   :  { %1371 = vmatmul.mubr.msk.f32.vlgmr.msra.gmra.mrb[4].mxu0 %vm66_vm0, %v1357_v19  ;;  %v139_v22 = vpop.f32.mrb[1].mxu0  ;;  %v1556_v19 = vmov 0.0|0.0  }
  0xed   :  { %v1367_v23 = vpop.f32.mrb[2].mxu1  ;;  %1377 = vmatpush3.msra.mxu0 %v380_v9  ;;  %1501 = vmatprep.subr.bf16.mxu1 %v1556_v19 }
  0xee   :  { %v370_v24 = vpop.f32.mrb[3].mxu1  ;;  %1486 = vmatprep.subr.bf16.mxu0 %v1485_v33 }
  0xef   :  { %1373 = vmatprep.mubr.msk.f32.mxu0 %vm66_vm0, %v370_v24  ;;  %v1362_v25 = vpop.f32.mrb[2].mxu0 }
  0xf0   :  { %1374 = vmatmul.mubr.msk.f32.gmra.mrb[6].mxu0 %vm66_vm0, %v1367_v23  ;;  %v295_v26 = vpop.f32.mrb[3].mxu0 }
  0xf1   :  { %1378 = vmatprep.mubr.msk.f32.mxu0 %vm66_vm0, %v139_v22  ;;  %v815_v22 = vld [vmem:[#allocation2] sm:$0xf] }
  0xf4   :  { %1379 = vmatmul.mubr.msk.f32.vlgmr.msra.gmra.mrb[4].mxu0 %vm66_vm0, %v1352_v21 }
  0xf5   :  { %1381 = vmatprep.mubr.msk.f32.mxu0 %vm66_vm0, %v295_v26  ;;  %1488 = vmatpush3.bf16.msra.mxu0 %v1485_v33  ;;  %v1053_v33 = vld [vmem:[%s1829_s10 + $0x10] sm:$0xff] }
  0xf6   :  { %1490 = vmatprep.subr.bf16.mxu0 %v1489_v35 }
  0xf8   :  { %1382 = vmatmul.mubr.msk.f32.gmra.mrb[6].mxu0 %vm66_vm0, %v1362_v25  ;;  %v816_v25 = vunpack.c.l.bf16 %v815_v22 }
  0xf9   :  { %1492 = vmatpush3.bf16.msra.mxu0 %v1489_v35  ;;  %v1511_v35 = vpack.c.bf16 %v1054_v34, %v1053_v33 }
  0xfa   :  { %1494 = vmatprep.subr.bf16.mxu0 %v1493_v55 }
  0xfd   :  { %1496 = vmatpush3.bf16.msra.mxu0 %v1493_v55  ;;  %v1145_v55 = vld [vmem:[%s1830_s11 + $0x10] sm:$0xff] }
  0xfe   :  { %1498 = vmatprep.subr.bf16.mxu0 %v1497_v58  ;;  %v1519_v57 = vpack.c.bf16 %v1146_v56, %v1145_v55 }
 0x101   :  { %1500 = vmatpush3.bf16.msra.mxu0 %v1497_v58  ;;  %v1057_v58 = vsub.s32 3, %v1723_v37 }
 0x102   :  { %1508 = vmatprep.subr.bf16.mxu0 %v1507_v32 }
 0x103   :  { %v1058_v59 = vrot.slane %v1729_v39, %v1057_v58 }
 0x1c7   :  { %v1380_v41 = vpop.f32.mrb[4].mxu0 }
 0x1c8   :  { %v581_v42 = vadd.f32 %v1380_v41, %v579_v40  ;;  %v557_v43 = vpop.f32.mrb[5].mxu0 }
 0x1c9   :  { %v580_v44 = vadd.f32 %v579_v40, %v557_v43  ;;  %v1045_v43 = vsub.s32 2, %v1723_v37 }
 0x1ca   :  { %v585_v47 = vmax.f32 %v581_v42, 0.0 }
 0x1cb   :  { %v584_v45 = vmax.f32 %v580_v44, 0.0  ;;  %v1383_v46 = vpop.f32.mrb[6].mxu0 }
 0x1cc   :  { %v583_v48 = vadd.f32 %v1383_v46, %v579_v40  ;;  %v567_v49 = vpop.f32.mrb[7].mxu0  ;;  %v1046_v46 = vrot.slane %v1729_v39, %v1045_v43 }
 0x1cd   :  { %v582_v50 = vadd.f32 %v579_v40, %v567_v49  ;;  %1400 = vmatprep.mubr.msk.f32.mxu1 %vm600_vm1, %v584_v45  ;;  %v1515_v40 = vpack.c.bf16 %v1144_v38, %v1143_v36 }
 0x1ce   :  { %1401 = vmatmul.mubr.msk.f32.vlgmr.msra.gmra.mrb[4].mxu1 %vm600_vm1, %v585_v47  ;;  %v587_v52 = vmax.f32 %v583_v48, 0.0 }
 0x1cf   :  { %v586_v51 = vmax.f32 %v582_v50, 0.0 }
 0x1d1   :  { %1403 = vmatprep.mubr.msk.f32.mxu1 %vm600_vm1, %v586_v51 }
 0x1d2   :  { %1404 = vmatmul.mubr.msk.f32.gmra.mrb[6].mxu1 %vm600_vm1, %v587_v52 }
 0x1d3   :  { %1432 = vmatprep.mubr.msk.f32.mxu1 %vm1557_vm2, %v1558_v20 }
 0x2a1   :  { %v1402_v61 = vpop.f32.mrb[4].mxu1 }
 0x2a2   :  { %v685_v62 = vadd.f32 %v1402_v61, %v599_v60  ;;  %v679_v63 = vpop.f32.mrb[5].mxu1 }
 0x2a3   :  { %v680_v1 = vadd.f32 %v679_v63, %v599_v60 }
 0x2a4   :  { %v699_v3 = vmax.f32 %v685_v62, 0.0 }
 0x2a5   :  { %v698_v6 = vmax.f32 %v680_v1, 0.0  ;;  %v1405_v7 = vpop.f32.mrb[6].mxu1 }
 0x2a6   :  { %v695_v8 = vadd.f32 %v1405_v7, %v599_v60  ;;  %v689_v9 = vpop.f32.mrb[7].mxu1  ;;  %v707_v12 = vmul.f32 %v703_v5, %v699_v3 }
 0x2a7   :  { %v706_v10 = vmul.f32 %v702_v4, %v698_v6  ;;  %v690_v11 = vadd.f32 %v689_v9, %v599_v60  ;;  %v1149_v4 = vsub.s32 4, %v1723_v37 }
 0x2a8   :  { %v701_v13 = vmax.f32 %v695_v8, 0.0 }
 0x2a9   :  { %v700_v16 = vmax.f32 %v690_v11, 0.0  ;;  %1422 = vmatprep.mubr.msk.f32.mxu0 %vm600_vm1, %v706_v10  ;;  %v1150_v5 = vrot.slane %v1729_v39, %v1149_v4 }
 0x2aa   :  { %1423 = vmatmul.mubr.msk.f32.vlgmr.msra.gmra.mrb[8].mxu0 %vm600_vm1, %v707_v12  ;;  %v709_v18 = vmul.f32 %v705_v15, %v701_v13 }
 0x2ab   :  { %v708_v17 = vmul.f32 %v704_v14, %v700_v16  ;;  %1510 = vmatpush3.bf16.msra.mxu0 %v1507_v32 }
 0x2ac   :  { %1512 = vmatprep.subr.bf16.mxu0 %v1511_v35 }
 0x2ad   :  { %1425 = vmatprep.mubr.msk.f32.mxu0 %vm600_vm1, %v708_v17 }
 0x2ae   :  { %1426 = vmatmul.mubr.msk.f32.gmra.mrb[10].mxu0 %vm600_vm1, %v709_v18 }
 0x2af   :  { %1514 = vmatpush3.bf16.msra.mxu0 %v1511_v35 }
 0x37d   :  { %v1424_v21 = vpop.f32.mrb[8].mxu0 }
 0x37e   :  { %v796_v23 = vpop.f32.mrb[9].mxu0 }
 0x37f   :  { %v1502_v24 = vpack.c.bf16 %v1424_v21, %v796_v23 }
 0x381   :  { %v1427_v26 = vpop.f32.mrb[10].mxu0  ;;  %1503 = vmatpush3.bf16.msra.mxu1 %v1502_v24 }
 0x382   :  { %v806_v27 = vpop.f32.mrb[11].mxu0  ;;  %1504 = vmatprep.subr.bf16.mxu1 %v1556_v19 }
 0x383   :  { %v1505_v28 = vpack.c.bf16 %v1427_v26, %v806_v27 }
 0x384   :  { %1433 = vmatmul.mubr.msk.f32.vlgmr.msra.gmra.mrb[8].mxu1 %vm817_vm3, %v816_v25 }
 0x385   :  { %1506 = vmatpush3.bf16.msra.mxu1 %v1505_v28  ;;  %1439 = vmatprep.mubr.msk.f32.mxu1 %vm1557_vm2, %v1558_v20 }
 0x386   :  { %1442 = vmatprep.subr.mxu1 %v961_v29 }
 0x388   :  { %1440 = vmatmul.mubr.msk.f32.vlgmr.msra.gmra.mrb[10].mxu1 %vm817_vm3, %v816_v25 }
 0x389   :  { %1443 = vmatpush3.msra.mxu1 %v961_v29  ;;  %1444 = vmatprep.mubr.msk.f32.mxu1 %vm66_vm0, %v1644_v0 }
 0x38a   :  { %1516 = vmatprep.subr.bf16.mxu1 %v1515_v40 }
 0x38c   :  { %1445 = vmatmul.mubr.msk.f32.vlgmr.msra.gmra.mrb[12].mxu1 %vm66_vm0, %v1652_v2 }
 0x38d   :  { %1518 = vmatpush3.bf16.msra.mxu1 %v1515_v40 }
 0x38e   :  { %1520 = vmatprep.subr.bf16.mxu1 %v1519_v57 }
 0x391   :  { %1522 = vmatpush3.bf16.msra.mxu1 %v1519_v57 }
 0x457   :  { %v887_v41 = vpop.f32.mrb[8].mxu1 }
 0x458   :  { %v1434_v42 = vpop.f32.mrb[9].mxu1 }
 0x45b   :  { %v957_v44 = vpop.f32.mrb[10].mxu1 }
 0x45c   :  { %v1441_v45 = vpop.f32.mrb[11].mxu1 }
 0x45f   :  { %v1446_v47 = vpop.f32.mrb[12].mxu1 }
 0x460   :  { %v1040_v48 = vadd.f32 %v1446_v47, %v957_v44  ;;  %v1034_v49 = vpop.f32.mrb[13].mxu1 }
 0x461   :  { %v1035_v50 = vadd.f32 %v1034_v49, %v887_v41 }
 0x462   :  { %v1048_v51 = vadd.f32 %v1046_v46, %v1040_v48 }
 0x463   :  { %v1047_v52 = vadd.f32 %v1046_v46, %v1035_v50 }
 0x464   :  { %v1050_v54 = vmax.f32 %v1048_v51, 0.0 }
 0x465   :  { %v1049_v53 = vmax.f32 %v1047_v52, 0.0 }
 0x467   :  { %1455 = vmatprep.mubr.msk.f32.mxu0 %vm1059_vm4, %v1049_v53 }
 0x468   :  { %1456 = vmatmul.mubr.msk.f32.vlgmr.msra.gmra.mrb[12].mxu0 %vm1059_vm4, %v1050_v54 }
 0x53b   :  { %v1457_v60 = vpop.f32.mrb[12].mxu0 }
 0x53c   :  { %v1138_v61 = vadd.f32 %v1457_v60, %v1058_v59  ;;  %v1132_v62 = vpop.f32.mrb[13].mxu0 }
 0x53d   :  { %v1133_v63 = vadd.f32 %v1132_v62, %v1058_v59 }
 0x53e   :  { %v1142_v3 = vmax.f32 %v1138_v61, 0.0 }
 0x53f   :  { %v1141_v1 = vmax.f32 %v1133_v63, 0.0 }
 0x541   :  { %1466 = vmatprep.mubr.msk.f32.mxu1 %vm1059_vm4, %v1141_v1 }
 0x542   :  { %1467 = vmatmul.mubr.msk.f32.vlgmr.msra.gmra.mrb[14].mxu1 %vm1059_vm4, %v1142_v3 }
 0x615   :  { %v1468_v6 = vpop.f32.mrb[14].mxu1 }
 0x616   :  { %v1229_v7 = vadd.f32 %v1468_v6, %v1150_v5  ;;  %v1223_v8 = vpop.f32.mrb[15].mxu1 }
 0x617   :  { %v1224_v9 = vadd.f32 %v1223_v8, %v1150_v5 }
 0x618   :  { %v1233_v10 = vadd.f32 %v1229_v7, %v1652_v2 }
 0x619   :  { %v1232_v11 = vadd.f32 %v1224_v9, %v1644_v0 }
 0x61a   :  { %1235 = vst.msk [vmem:[%s1832_s13 + $0x8] sm:$0xff] %vm66_vm0, %v1233_v10 }
 0x61b   :  { %1234 = vst.msk [vmem:[%s1832_s13] sm:$0xff] %vm66_vm0, %v1232_v11 }
 0x61c   :  { %1240 = vsyncpa [#allocation3], 1 }

</bundles_post_ra>
